<compile_context>
chip_gen: v7x
topology: tpu7x:2x2x1
jax: 0.10.0
libtpu: 0.0.40
codegen_flags: <defaults>
</compile_context>

<pallas_src>
import functools

import numpy as np
import jax
import jax.numpy as jnp
from jax.experimental import pallas as pl
from jax.experimental.pallas import tpu as pltpu

VMEM_LIMIT = 32 * 1024 * 1024  # fits all three generations (v7x has 64 MiB physical)


# ----------------------------------------------------------------------------
# Pallas kernel 1: out = maybe_relu((A @ B) * scale + bias), bf16 MXU, f32 epilogue
# ----------------------------------------------------------------------------
def _matmul_scale_bias_kernel(a_ref, b_ref, sb_ref, o_ref, *, apply_relu):
    acc = jnp.dot(a_ref[...], b_ref[...], preferred_element_type=jnp.float32)
    out = acc * sb_ref[0:1, :] + sb_ref[1:2, :]
    if apply_relu:
        out = jnp.maximum(out, 0.0)
    o_ref[...] = out.astype(o_ref.dtype)


def matmul_scale_bias(a, b, scale, bias, *, apply_relu=False, out_dtype=jnp.float32):
    """(M,K)@(K,N) * scale[N] + bias[N], optional ReLU, tiled over M."""
    M, K = a.shape
    K2, N = b.shape
    assert K == K2
    # Tile choice: keep enough grid steps for megacore (v7x) without exploding
    # per-step overhead on single-TC chips.
    if M >= 1024:
        tm = 128
    elif M >= 64:
        tm = 64
    else:
        tm = M
    grid_m = pl.cdiv(M, tm)

    sb = jnp.stack([scale, bias], axis=0).astype(jnp.float32)  # (2, N)
    cost = pl.CostEstimate(
        flops=2 * M * K * N,
        transcendentals=0,
        bytes_accessed=2 * (M * K + K * N) + 4 * 2 * N
        + np.dtype(out_dtype).itemsize * M * N,
    )

    out = pl.pallas_call(
        functools.partial(_matmul_scale_bias_kernel, apply_relu=apply_relu),
        out_shape=jax.ShapeDtypeStruct((M, N), out_dtype),
        grid_spec=pltpu.PrefetchScalarGridSpec(
            num_scalar_prefetch=0,
            grid=(grid_m,),
            in_specs=[
                pl.BlockSpec((tm, K), lambda i: (i, 0)),   # A row tile, full K
                pl.BlockSpec((K, N), lambda i: (0, 0)),    # full B
                pl.BlockSpec((2, N), lambda i: (0, 0)),    # merged scale/bias
            ],
            out_specs=pl.BlockSpec((tm, N), lambda i: (i, 0)),
        ),
        compiler_params=pltpu.CompilerParams(
            dimension_semantics=("parallel",),
            vmem_limit_bytes=VMEM_LIMIT,
        ),
        cost_estimate=cost,
    )(a.astype(jnp.bfloat16), b.astype(jnp.bfloat16), sb)
    return out


# ----------------------------------------------------------------------------
# Pallas kernel 2: implicit-GEMM 3x3 conv (pad=1) + scale/bias (+ ReLU)
#   grid over batch; 9 shifted-window bf16 matmuls accumulated in f32 in-kernel.
# ----------------------------------------------------------------------------
def _conv3x3_igemm_kernel(x_ref, w_ref, sb_ref, o_ref, *, apply_relu):
    _, hp, wp, cin = x_ref.shape
    h, w = hp - 2, wp - 2
    nout = o_ref.shape[-1]
    acc = jnp.zeros((h * w, nout), jnp.float32)
    for dy in range(3):
        for dx in range(3):
            patch = x_ref[0, dy:dy + h, dx:dx + w, :].reshape(h * w, cin)
            acc = acc + jnp.dot(patch, w_ref[dy * 3 + dx],
                                preferred_element_type=jnp.float32)
    out = acc * sb_ref[0:1, :] + sb_ref[1:2, :]
    if apply_relu:
        out = jnp.maximum(out, 0.0)
    o_ref[...] = out.reshape(1, h, w, nout).astype(o_ref.dtype)


def _fold_bn(bn, cout, eps=1e-5):
    if bn is None:
        return jnp.ones((cout,), jnp.float32), jnp.zeros((cout,), jnp.float32)
    gamma, beta, mean, var = bn
    scale = gamma / jnp.sqrt(var + eps)
    shift = beta - mean * scale
    return scale, shift


def conv3x3_igemm(x_nhwc, w_oihw, conv_bias, bn=None, relu=False,
                  out_dtype=jnp.float32):
    """3x3 / pad-1 conv (torch OIHW weights) + eval-mode BN + optional ReLU."""
    n, h, w, cin = x_nhwc.shape
    cout = w_oihw.shape[0]
    nout = ((cout + 127) // 128) * 128          # lane-dense output slab

    wt = jnp.transpose(w_oihw, (2, 3, 1, 0)).reshape(9, cin, cout)
    scale, shift = _fold_bn(bn, cout)
    eff_bias = conv_bias * scale + shift        # (conv + b) * scale + shift
    if nout != cout:
        wt = jnp.pad(wt, ((0, 0), (0, 0), (0, nout - cout)))
        scale = jnp.pad(scale, (0, nout - cout), constant_values=1.0)
        eff_bias = jnp.pad(eff_bias, (0, nout - cout))
    sb = jnp.stack([scale, eff_bias], axis=0).astype(jnp.float32)

    x_pad = jnp.pad(x_nhwc, ((0, 0), (1, 1), (1, 1), (0, 0))).astype(jnp.bfloat16)

    cost = pl.CostEstimate(
        flops=2 * n * h * w * 9 * cin * nout,
        transcendentals=0,
        bytes_accessed=2 * (n * (h + 2) * (w + 2) * cin + 9 * cin * nout)
        + np.dtype(out_dtype).itemsize * n * h * w * nout,
    )

    out = pl.pallas_call(
        functools.partial(_conv3x3_igemm_kernel, apply_relu=relu),
        out_shape=jax.ShapeDtypeStruct((n, h, w, nout), out_dtype),
        grid_spec=pltpu.PrefetchScalarGridSpec(
            num_scalar_prefetch=0,
            grid=(n,),
            in_specs=[
                pl.BlockSpec((1, h + 2, w + 2, cin), lambda b: (b, 0, 0, 0)),
                pl.BlockSpec((9, cin, nout), lambda b: (0, 0, 0)),
                pl.BlockSpec((2, nout), lambda b: (0, 0)),
            ],
            out_specs=pl.BlockSpec((1, h, w, nout), lambda b: (b, 0, 0, 0)),
        ),
        compiler_params=pltpu.CompilerParams(
            dimension_semantics=("parallel",),
            vmem_limit_bytes=VMEM_LIMIT,
        ),
        cost_estimate=cost,
    )(x_pad, wt.astype(jnp.bfloat16), sb)
    return out[..., :cout]


# ----------------------------------------------------------------------------
# Glue: im2col (only for the tiny-cin fused branch conv), bilinear 2-tap lerp
# ----------------------------------------------------------------------------
def _im2col(x, kh, kw, ph, pw):
    """x: (N, H, W, C) -> (N*Ho*Wo, kh*kw*C) with K ordered (dy, dx, c)."""
    n, h, w, c = x.shape
    xp = jnp.pad(x, ((0, 0), (ph, ph), (pw, pw), (0, 0)))
    ho = h + 2 * ph - kh + 1
    wo = w + 2 * pw - kw + 1
    cols = []
    for dy in range(kh):
        for dx in range(kw):
            cols.append(xp[:, dy:dy + ho, dx:dx + wo, :])
    patches = jnp.concatenate(cols, axis=-1)
    return patches.reshape(n * ho * wo, kh * kw * c), (n, ho, wo)


def _bilinear_resize_axis(x, axis, out_size):
    """PyTorch bilinear (align_corners=False) resize along one axis: 2-tap lerp
    with channels kept on the lane axis (static gather + VPU weighted add)."""
    in_size = x.shape[axis]
    if in_size == out_size:
        return x
    scale = in_size / out_size
    dst = np.arange(out_size)
    src = np.maximum((dst + 0.5) * scale - 0.5, 0.0)
    i0 = np.minimum(np.floor(src).astype(np.int64), in_size - 1)
    i1 = np.minimum(i0 + 1, in_size - 1)
    l1 = (src - i0).astype(np.float32)
    l0 = (1.0 - l1).astype(np.float32)
    x0 = jnp.take(x, jnp.asarray(i0), axis=axis).astype(jnp.float32)
    x1 = jnp.take(x, jnp.asarray(i1), axis=axis).astype(jnp.float32)
    bshape = [1] * x.ndim
    bshape[axis] = out_size
    y = x0 * jnp.asarray(l0).reshape(bshape) + x1 * jnp.asarray(l1).reshape(bshape)
    return y.astype(x.dtype)


def _branch_convs_fused(x, p, eps=1e-5):
    """conv3x3 / conv3x5 / conv5x3 (+BN+ReLU) fused into one 5x5-window matmul.

    Returns (n, h, w, 768) bf16; channel blocks:
      [0:256]   -> conv3x3 output (valid on the full h x w grid)
      [256:512] -> conv3x5 output, valid on cols 1..w-2 (true width w-2)
      [512:768] -> conv5x3 output, valid on rows 1..h-2 (true height h-2)
    """
    n, h, w, cin = x.shape
    big = jnp.zeros((5, 5, cin, 768), jnp.float32)
    big = big.at[1:4, 1:4, :, 0:256].set(jnp.transpose(p["w3x3"], (2, 3, 1, 0)))
    big = big.at[1:4, 0:5, :, 256:512].set(jnp.transpose(p["w3x5"], (2, 3, 1, 0)))
    big = big.at[0:5, 1:4, :, 512:768].set(jnp.transpose(p["w5x3"], (2, 3, 1, 0)))
    wmat = big.reshape(25 * cin, 768)

    s1, sh1 = _fold_bn((p["bn1_g"], p["bn1_b"], p["bn1_m"], p["bn1_v"]), 256, eps)
    s2, sh2 = _fold_bn((p["bn2_g"], p["bn2_b"], p["bn2_m"], p["bn2_v"]), 256, eps)
    s3, sh3 = _fold_bn((p["bn3_g"], p["bn3_b"], p["bn3_m"], p["bn3_v"]), 256, eps)
    scale = jnp.concatenate([s1, s2, s3])
    bias = jnp.concatenate([p["b3x3"] * s1 + sh1,
                            p["b3x5"] * s2 + sh2,
                            p["b5x3"] * s3 + sh3])

    a, (n_, ho, wo) = _im2col(x, 5, 5, 2, 2)           # cin tiny -> no blow-up
    out = matmul_scale_bias(a, wmat, scale, bias,
                            apply_relu=True, out_dtype=jnp.bfloat16)
    return out.reshape(n_, ho, wo, 768)


# ----------------------------------------------------------------------------
# ITM forward
# ----------------------------------------------------------------------------
def itm_forward(x_nchw, p):
    x = jnp.transpose(x_nchw, (0, 2, 3, 1)).astype(jnp.float32)   # NHWC
    n, h, w, cin = x.shape

    if w < 5:  # early-exit branch: plain 3x3 conv, no BN, no ReLU (matches reference)
        y = conv3x3_igemm(x, p["conv2d_w"], p["conv2d_b"], bn=None, relu=False)
        return jnp.transpose(y, (0, 3, 1, 2))

    # TODO(synk): BatchNorm2d is folded in eval mode (fixed running stats);
    # PyTorch training-mode batch statistics are not reproduced here.
    fused = _branch_convs_fused(x, p)                              # (n,h,w,768) bf16
    out_3x3 = fused[..., 0:256]                                    # (n,h,w,256)
    out_3x5 = _bilinear_resize_axis(fused[:, :, 1:w - 1, 256:512],
                                    axis=2, out_size=w)            # width (w-2)->w
    out_5x3 = _bilinear_resize_axis(fused[:, 1:h - 1, :, 512:768],
                                    axis=1, out_size=h)            # height (h-2)->h

    out_cat = jnp.concatenate([out_3x3, out_3x5, out_5x3], axis=-1)  # (n,h,w,768) bf16
    # Final 3x3 mix conv: no BN, no ReLU (matches reference). Implicit GEMM.
    y = conv3x3_igemm(out_cat, p["wmix"], p["bmix"], bn=None, relu=False,
                      out_dtype=jnp.float32)                         # (n,h,w,Cout)
    return jnp.transpose(y, (0, 3, 1, 2))                            # NCHW


# ----------------------------------------------------------------------------
# Deterministic parameter init (shapes match nn.Module.__init__)
# ----------------------------------------------------------------------------
def init_params(key, input_channels, output_channels):
    ks = jax.random.split(key, 24)

    def rnd(k, shape, s=0.05):
        return jax.random.normal(k, shape, jnp.float32) * s

    p = {
        "conv2d_w": rnd(ks[0], (output_channels, input_channels, 3, 3)),
        "conv2d_b": rnd(ks[1], (output_channels,)),
        "w3x3": rnd(ks[2], (256, input_channels, 3, 3)),
        "b3x3": rnd(ks[3], (256,)),
        "w3x5": rnd(ks[4], (256, input_channels, 3, 5)),
        "b3x5": rnd(ks[5], (256,)),
        "w5x3": rnd(ks[6], (256, input_channels, 5, 3)),
        "b5x3": rnd(ks[7], (256,)),
        "wmix": rnd(ks[8], (output_channels, 768, 3, 3)),
        "bmix": rnd(ks[9], (output_channels,)),
    }
    for i, name in enumerate(["bn1", "bn2", "bn3"]):
        base = 10 + 4 * i
        p[f"{name}_g"] = 1.0 + rnd(ks[base + 0], (256,), 0.02)
        p[f"{name}_b"] = rnd(ks[base + 1], (256,), 0.02)
        p[f"{name}_m"] = rnd(ks[base + 2], (256,), 0.02)
        p[f"{name}_v"] = 1.0 + jnp.abs(rnd(ks[base + 3], (256,), 0.1))
    return p


if __name__ == "__main__":
    key = jax.random.PRNGKey(0)
    kx, kp = jax.random.split(key)

    input_channels, output_channels = 4, 64
    x = jax.random.normal(kx, (2, input_channels, 16, 16), jnp.float32)
    params = init_params(kp, input_channels, output_channels)

    out = itm_forward(x, params)
    out = jax.block_until_ready(out)
    assert out.shape == (2, output_channels, 16, 16), out.shape
    assert jnp.isfinite(out).all()
    print("KERNEL_OK")
</pallas_src>

<mosaic_0001>
module attributes {stable_mosaic.version = 11 : i64} {
  func.func @_matmul_scale_bias_kernel(%arg0: i32, %arg1: memref<64x100xbf16, #tpu.memory_space<vmem>>, %arg2: memref<100x768xbf16, #tpu.memory_space<vmem>>, %arg3: memref<2x768xf32, #tpu.memory_space<vmem>>, %arg4: memref<64x768xbf16, #tpu.memory_space<vmem>>) attributes {dimension_semantics = [#tpu.dimension_semantics<parallel>], iteration_bounds = array<i64: 8>, scalar_prefetch = 0 : i64, scratch_operands = 0 : i64, tpu.core_type = #tpu.core_type<tc>, window_params = [{transform_indices = @transform_0, window_bounds = array<i64: 64, 100>}, {pipeline_mode = #tpu.pipeline_mode<synchronous>, transform_indices = @transform_1, window_bounds = array<i64: 100, 768>}, {pipeline_mode = #tpu.pipeline_mode<synchronous>, transform_indices = @transform_2, window_bounds = array<i64: 2, 768>}, {transform_indices = @transform_3, window_bounds = array<i64: 64, 768>}]} {
    %c0 = arith.constant 0 : index
    %c0_0 = arith.constant 0 : index
    %0 = vector.load %arg1[%c0, %c0_0] : memref<64x100xbf16, #tpu.memory_space<vmem>>, vector<64x100xbf16>
    %c0_1 = arith.constant 0 : index
    %c0_2 = arith.constant 0 : index
    %1 = vector.load %arg2[%c0_1, %c0_2] : memref<100x768xbf16, #tpu.memory_space<vmem>>, vector<100x768xbf16>
    %cst = arith.constant dense<0.000000e+00> : vector<64x768xf32>
    %2 = tpu.matmul %0, %1, %cst {dimension_numbers = #tpu.dot_dimension_numbers<[1], [0], [0], [1], [0, 0, 1, 1], [], []>} : vector<64x100xbf16>, vector<100x768xbf16>, vector<64x768xf32> -> vector<64x768xf32>
    %c0_3 = arith.constant 0 : index
    %c0_4 = arith.constant 0 : index
    %3 = vector.load %arg3[%c0_3, %c0_4] : memref<2x768xf32, #tpu.memory_space<vmem>>, vector<1x768xf32>
    %4 = vector.broadcast %3 : vector<1x768xf32> to vector<64x768xf32>
    %5 = arith.mulf %2, %4 : vector<64x768xf32>
    %c1 = arith.constant 1 : index
    %c0_5 = arith.constant 0 : index
    %6 = vector.load %arg3[%c1, %c0_5] : memref<2x768xf32, #tpu.memory_space<vmem>>, vector<1x768xf32>
    %7 = vector.broadcast %6 : vector<1x768xf32> to vector<64x768xf32>
    %8 = arith.addf %5, %7 : vector<64x768xf32>
    %cst_6 = arith.constant 0.000000e+00 : f32
    %9 = vector.broadcast %cst_6 : f32 to vector<64x768xf32>
    %10 = arith.maximumf %8, %9 : vector<64x768xf32>
    %11 = arith.truncf %10 : vector<64x768xf32> to vector<64x768xbf16>
    %c0_7 = arith.constant 0 : index
    %c0_8 = arith.constant 0 : index
    %12 = vector.load %arg4[%c0_7, %c0_8] : memref<64x768xbf16, #tpu.memory_space<vmem>>, vector<64x768xbf16>
    tpu.vector_store %arg4[%c0_7, %c0_8], %11 {strides = array<i32>} : memref<64x768xbf16, #tpu.memory_space<vmem>>, vector<64x768xbf16>,
    return
  }
  func.func @transform_0(%arg0: i32) -> (i32, i32) {
    %c0_i32 = arith.constant 0 : i32
    %c0_i32_0 = arith.constant 0 : i32
    return %arg0, %c0_i32 : i32, i32
  }
  func.func @transform_1(%arg0: i32) -> (i32, i32) {
    %c0_i32 = arith.constant 0 : i32
    %c0_i32_0 = arith.constant 0 : i32
    %c0_i32_1 = arith.constant 0 : i32
    return %c0_i32, %c0_i32_0 : i32, i32
  }
  func.func @transform_2(%arg0: i32) -> (i32, i32) {
    %c0_i32 = arith.constant 0 : i32
    %c0_i32_0 = arith.constant 0 : i32
    %c0_i32_1 = arith.constant 0 : i32
    return %c0_i32, %c0_i32_0 : i32, i32
  }
  func.func @transform_3(%arg0: i32) -> (i32, i32) {
    %c0_i32 = arith.constant 0 : i32
    %c0_i32_0 = arith.constant 0 : i32
    return %arg0, %c0_i32 : i32, i32
  }
}

</mosaic_0001>

<bundles_post_ra>
// kernel: tpu_custom_call.1
= control target key start
LH: loop header
LB: loop body
LE: loop exit
PB: predicated region body
PF: predicated region fallthrough
CT: control target
= control target key end

     0   :  { %8 = vsyncpa [#allocation3], 0  ;;  %s1921_s0 = inlined_call_operand.vmem [shape: bf16[512,100], index: 0, kind: input, shape index: {}]   ;;  %s1922_s1 = inlined_call_operand.vmem [shape: bf16[100,768], index: 1, kind: input, shape index: {}]   ;;  %s1923_s2 = inlined_call_operand.vmem [shape: f32[2,768], index: 2, kind: input, shape index: {}]   ;;  %s1924_s3 = inlined_call_operand.hbm [shape: bf16[512,768], index: 3, kind: output, shape index: {}]  }
   0x1   :  { %10 = vsyncpa [#allocation3 + $0x1], 0  ;;  %s1471_s12 = smov 0   ;;  %s1473_s13 = smov 0  }
   0x2   :  { %s1475_s14 = smov 0   ;;  %s1477_s15 = smov 0  }
   0x3 LB: > { %s1492_s16 = sadd.s32 4294967295, %s1445_s15   ;;  %s1140_s17 = sadd.s32 4294967294, %s1445_s15   ;;  %s1445_s15 = sphi %s1477_s15, %s1930_s15   ;;  %s1441_s14 = sphi %s1475_s14, %s1929_s14   ;;  %s1437_s13 = sphi %s1473_s13, %s1928_s13   ;;  %s1433_s12 = sphi %s1471_s12, %s1927_s12  }
   0x4   : > { %s1496_s18 = sadd.s32 1, %s1445_s15   ;;  %s91_s19 = sadd.s32 1, %s1441_s14 }
   0x5   : > { %s88_s20 = ssub.s32 %s1445_s15, %s1496_s18  ;;  %p101_p0 = scmp.ne.s32.totalorder %s1441_s14, %s1437_s13 }
   0x6   : > { %p89_p1 = scmp.eq.s32.totalorder %s88_s20, 0  ;;  %p102_p2 = scmp.eq.s32.totalorder %s1492_s16, 7 }
   0x7   : > { %p107_p3 = scmp.ne.s32.totalorder %s1437_s13, %s1433_s12  ;;  %p108_p4 = scmp.eq.s32.totalorder %s1140_s17, 7 }
   0x8   : > { %s1507_s21 = scalar_select %p89_p1, %s1441_s14, %s91_s19  }
   0x9   : > { %p1509_p5 = por %p102_p2, %p101_p0  ;;  %p1513_p6 = por %p108_p4, %p107_p3 }
   0xa   : > { %p1143_p7 = scmp.ge.s32.totalorder %s1445_s15, 1  ;;  %p141_p8 = scmp.lt.s32.totalorder %s1445_s15, 9 }
   0xc   : > { %p142_p9 = pnand %p1143_p7, %p141_p8 }
   0xd   : > { %v1319_v0 = vld [vmem:[%s1922_s1 + $0x4] ss:$24 sps:$4 sm:$0xff] (!%p142_p9)   ;;  %v1447_v2 = vmov (!%p142_p9), 0   ;;  %s1144_s28 = sshll.u32 (!%p142_p9), %s1492_s16, 3  ;;  %v1323_v3 = vld [vmem:[%s1922_s1] ss:$24 sps:$4 sm:$0xff] (!%p142_p9)   ;;  %v688_v53 = vlaneseq (!%p142_p9) }
   0xe   : > { %145 = sbr.rel (%p142_p9) target bundleno = 322 (0x142), region = 32  ;;  %v1321_v1 = vld [vmem:[%s1922_s1 + $0xc] ss:$24 sps:$4 sm:$0xff] (!%p142_p9)   ;;  %499 = vmatprep.mubr.bf16.mxu0 (!%p142_p9), %v1447_v2  ;;  %572 = vmatprep.mubr.bf16.mxu1 (!%p142_p9), %v1447_v2  ;;  %v1324_v4 = vld [vmem:[%s1922_s1 + $0x8] ss:$24 sps:$4 sm:$0xff] (!%p142_p9)   ;;  %p166_p10 = scmp.lt.s32.totalorder (!%p142_p9), %s1144_s28, 63 }
   0xf   : > { %467 = vmatprep.subr.bf16.mxu0 (!%p142_p9), %v1319_v0  ;;  %540 = vmatprep.subr.bf16.mxu1 (!%p142_p9), %v1321_v1  ;;  %v1325_v5 = vld [vmem:[%s1922_s1 + $0x34] ss:$24 sps:$4 sm:$0xff] (!%p142_p9)   ;;  %v1329_v7 = vld [vmem:[%s1922_s1 + $0x30] ss:$24 sps:$4 sm:$0xff] (!%p142_p9)   ;;  %v1331_v9 = vld [vmem:[%s1922_s1 + $0x64] ss:$24 sps:$4 sm:$0xff] (!%p142_p9)  }
  0x10   : > { %468 = vmatpush1.bf16.msra.mxu0 (!%p142_p9), %v1323_v3  ;;  %541 = vmatpush1.bf16.msra.mxu1 (!%p142_p9), %v1324_v4  ;;  %v1327_v6 = vld [vmem:[%s1922_s1 + $0x3c] ss:$24 sps:$4 sm:$0xff] (!%p142_p9)   ;;  %v1330_v8 = vld [vmem:[%s1922_s1 + $0x38] ss:$24 sps:$4 sm:$0xff] (!%p142_p9)   ;;  %v1333_v10 = vld [vmem:[%s1922_s1 + $0x6c] ss:$24 sps:$4 sm:$0xff] (!%p142_p9)  }
  0x11   : > { %469 = vmatprep.subr.bf16.mxu0 (!%p142_p9), %v1325_v5  ;;  %542 = vmatprep.subr.bf16.mxu1 (!%p142_p9), %v1327_v6  ;;  %v1335_v11 = vld [vmem:[%s1922_s1 + $0x60] ss:$24 sps:$4 sm:$0xff] (!%p142_p9)   ;;  %v1337_v13 = vld [vmem:[%s1922_s1 + $0x94] ss:$24 sps:$4 sm:$0xff] (!%p142_p9)   ;;  %v1341_v15 = vld [vmem:[%s1922_s1 + $0x90] ss:$24 sps:$4 sm:$0xff] (!%p142_p9)  }
  0x12   : > { %v1336_v12 = vld [vmem:[%s1922_s1 + $0x68] ss:$24 sps:$4 sm:$0xff] (!%p142_p9)   ;;  %v1339_v14 = vld [vmem:[%s1922_s1 + $0x9c] ss:$24 sps:$4 sm:$0xff] (!%p142_p9)   ;;  %v1342_v16 = vld [vmem:[%s1922_s1 + $0x98] ss:$24 sps:$4 sm:$0xff] (!%p142_p9)  }
  0x13   : > { %v1343_v17 = vld [vmem:[%s1922_s1 + $0xc4] ss:$24 sps:$4 sm:$0xff] (!%p142_p9)   ;;  %v1347_v19 = vld [vmem:[%s1922_s1 + $0xc0] ss:$24 sps:$4 sm:$0xff] (!%p142_p9)   ;;  %v1349_v21 = vld [vmem:[%s1922_s1 + $0xf4] ss:$24 sps:$4 sm:$0xff] (!%p142_p9)  }
  0x14   : > { %470 = vmatpush1.bf16.msra.mxu0 (!%p142_p9), %v1329_v7  ;;  %543 = vmatpush1.bf16.msra.mxu1 (!%p142_p9), %v1330_v8  ;;  %v1345_v18 = vld [vmem:[%s1922_s1 + $0xcc] ss:$24 sps:$4 sm:$0xff] (!%p142_p9)   ;;  %v1348_v20 = vld [vmem:[%s1922_s1 + $0xc8] ss:$24 sps:$4 sm:$0xff] (!%p142_p9)   ;;  %v1351_v22 = vld [vmem:[%s1922_s1 + $0xfc] ss:$24 sps:$4 sm:$0xff] (!%p142_p9)  }
  0x15   : > { %s1932_s28 = smov (!%p166_p10, %s1144_s28), 63  ;;  %471 = vmatprep.subr.bf16.mxu0 %v1331_v9  ;;  %544 = vmatprep.subr.bf16.mxu1 %v1333_v10  ;;  %v217_v23 = vld [vmem:[%s1922_s1 + $0x120] sm:$0x33]  ;;  %v218_v24 = vld [vmem:[%s1922_s1 + $0x128] sm:$0x33]  ;;  %vm448_vm0 = vcmask 1041408  }
  0x16   : > { %s1145_s24 = sshll.u32 %s1932_s28, 2  ;;  %v1353_v25 = vld [vmem:[%s1922_s1 + $0xf0] ss:$24 sps:$4 sm:$0xff]   ;;  %v1187_v27 = vcombine.high %v217_v23, %v217_v23  ;;  %v1189_v28 = vcombine.high %v218_v24, %v218_v24  ;;  %v1186_v29 = vcombine.low %v217_v23, %v217_v23  ;;  %v1188_v30 = vcombine.low %v218_v24, %v218_v24  ;;  %v1362_v33 = vld [vmem:[%s1922_s1 + $0x14] ss:$24 sps:$4 sm:$0xff]   ;;  %s162_s20 = sand.u32 1, %s1437_s13  }
  0x17   : > { %s1585_s7 = scalar_lea.vmem %s1921_s0, %s1145_s24  ;;  %v1354_v26 = vld [vmem:[%s1922_s1 + $0xf8] ss:$24 sps:$4 sm:$0xff]   ;;  %vm435_vm1 = vcmask 818176   ;;  %v1365_v36 = vld [vmem:[%s1922_s1 + $0x44] ss:$24 sps:$4 sm:$0xff]   ;;  %v1682_v54 = vshrl.u32 %v688_v53, 7 }
  0x18   : > { %472 = vmatpush1.bf16.msra.mxu0 %v1335_v11  ;;  %545 = vmatpush1.bf16.msra.mxu1 %v1336_v12  ;;  %v450_v31 = vsel %vm448_vm0, %v1186_v29, 0  ;;  %v456_v32 = vsel %vm448_vm0, %v1188_v30, 0  ;;  %v1613_v34 = vld [vmem:[%s1585_s7] sm:$0xff]   ;;  %v1360_v35 = vld [vmem:[%s1922_s1 + $0x10] ss:$24 sps:$4 sm:$0xff]   ;;  %v1380_v51 = vld [vmem:[%s1585_s7 + $0x18] sm:$0xff]  }
  0x19   : > { %473 = vmatprep.subr.bf16.mxu0 %v1337_v13  ;;  %546 = vmatprep.subr.bf16.mxu1 %v1339_v14  ;;  %v1363_v37 = vld [vmem:[%s1922_s1 + $0x40] ss:$24 sps:$4 sm:$0xff]   ;;  %v1369_v38 = vld [vmem:[%s1922_s1 + $0x74] ss:$24 sps:$4 sm:$0xff]   ;;  %v1367_v40 = vld [vmem:[%s1922_s1 + $0x70] ss:$24 sps:$4 sm:$0xff]  }
  0x1a   : > { %v1366_v39 = vld [vmem:[%s1585_s7 + $0x8] sm:$0xff]   ;;  %v1372_v41 = vld [vmem:[%s1922_s1 + $0xa4] ss:$24 sps:$4 sm:$0xff]   ;;  %v1370_v42 = vld [vmem:[%s1922_s1 + $0xa0] ss:$24 sps:$4 sm:$0xff]   ;;  %v690_v55 = vsub.s32 0, %v1682_v54 }
  0x1b   : > { %v1376_v43 = vld [vmem:[%s1922_s1 + $0xd4] ss:$24 sps:$4 sm:$0xff]   ;;  %v1374_v45 = vld [vmem:[%s1922_s1 + $0xd0] ss:$24 sps:$4 sm:$0xff]   ;;  %v1379_v46 = vld [vmem:[%s1922_s1 + $0x104] ss:$24 sps:$4 sm:$0xff]  }
  0x1c   : > { %474 = vmatpush1.bf16.msra.mxu0 %v1341_v15  ;;  %547 = vmatpush1.bf16.msra.mxu1 %v1342_v16  ;;  %v1373_v44 = vld [vmem:[%s1585_s7 + $0x10] sm:$0xff]   ;;  %v1377_v48 = vld [vmem:[%s1922_s1 + $0x100] ss:$24 sps:$4 sm:$0xff]   ;;  %v698_v56 = vsub.s32 2, %v1682_v54  ;;  %v694_v58 = vsub.s32 1, %v1682_v54  ;;  %v702_v59 = vsub.s32 3, %v1682_v54 }
  0x1d   : > { %475 = vmatprep.subr.bf16.mxu0 %v1343_v17  ;;  %548 = vmatprep.subr.bf16.mxu1 %v1345_v18  ;;  %v219_v47 = vld [vmem:[%s1922_s1 + $0x130] sm:$0x33]  ;;  %v1689_v57 = vld [vmem:[%s1923_s2] ss:$2 sm:$0x3f]  ;;  %s1275_s24 = smul.u32 192, %s162_s20 }
  0x1e   : > { %v1191_v49 = vcombine.high %v219_v47, %v219_v47  ;;  %v1190_v50 = vcombine.low %v219_v47, %v219_v47  ;;  %v1696_v60 = vld [vmem:[%s1923_s2 + $0x1] ss:$2 sm:$0x3f]  ;;  %v1699_v61 = vrot.slane %v1689_v57, %v690_v55  ;;  %v1702_v62 = vrot.slane %v1689_v57, %v698_v56  ;;  %s1276_s26 = smul.u32 3072, %s1492_s16  ;;  %s1880_s4 = scalar_lea.sflag [#allocation3], %s162_s20 }
  0x1f   : > { %v1705_v63 = vrot.slane %v1689_v57, %v694_v58  ;;  %v1708_v0 = vrot.slane %v1689_v57, %v702_v59  ;;  %v1711_v1 = vrot.slane %v1696_v60, %v690_v55  ;;  %v1718_v5 = vrot.slane %v1696_v60, %v694_v58  ;;  %s1743_s25 = scalar_lea.vmem [#allocation2], %s1275_s24  ;;  %s1448_s6 = smov [#allocation2]  }
  0x20   : > { %476 = vmatpush1.bf16.msra.mxu0 %v1347_v19  ;;  %549 = vmatpush1.bf16.msra.mxu1 %v1348_v20  ;;  %v462_v52 = vsel %vm448_vm0, %v1190_v50, 0  ;;  %v1721_v6 = vrot.slane %v1696_v60, %v702_v59  ;;  %s1078_s27 = sshll.u32 %s1743_s25, 4  ;;  %s1870_s16 = scalar_lea.hbm %s1924_s3, %s1276_s26  ;;  %s1872_s27 = int_to_ptr.vmem [resolvable:$true] %s1078_s27 }
  0x21   : > { %477 = vmatprep.subr.bf16.mxu0 %v1349_v21  ;;  %550 = vmatprep.subr.bf16.mxu1 %v1351_v22  ;;  %s1383_s5 = scalar_lea.vmem %s1872_s27, 3072  ;;  %s1387_s28 = sshll.u32 %s1448_s6, 4  ;;  %s1388_s28 = int_to_ptr.vmem [resolvable:$false] %s1387_s28 }
  0x22   : > { %p1384_p11 = scmp.ne.s32.totalorder %s1872_s27, %s1383_s5  ;;  %s1389_s8 = scalar_lea.vmem %s1388_s28, 6144 }
  0x23   : > { %p1390_p0 = scmp.lt.s32.totalorder %s1872_s27, %s1388_s28  ;;  %p1391_p1 = scmp.lt.s32.totalorder %s1389_s8, %s1383_s5 }
  0x24   : > { %478 = vmatpush1.bf16.msra.mxu0 %v1353_v25  ;;  %551 = vmatpush1.bf16.msra.mxu1 %v1354_v26  ;;  %p1385_p12 = pnand %p1384_p11, %p1509_p5 }
  0x25   : > { %1192 = vmatprep.subr.msk.bf16.mxu0 %vm448_vm0, %v1187_v27  ;;  %1197 = vmatprep.subr.msk.bf16.mxu1 %vm448_vm0, %v1189_v28  ;;  %p1392_p2 = por %p1391_p1, %p1390_p0 }
  0x26   : > { %p1386_p13 = pneg %p1385_p12 }
  0x28   : > { %480 = vmatpush1.bf16.msra.mxu0 %v450_v31  ;;  %553 = vmatpush1.bf16.msra.mxu1 %v456_v32  ;;  %p1393_p3 = pnand %p1392_p2, %p1386_p13 }
  0x29   : > { %613 = vmatprep.subr.bf16.mxu0 %v1362_v33  ;;  %1261 = vmatprep.subr.bf16.mxu1 %v1362_v33 }
  0x2b   : > { %1193 = vmatmul.mubr.msk.bf16.vlgmr.msra.gmra.mrb[0].mxu0 %vm435_vm1, %v1613_v34  ;;  %1198 = vmatmul.mubr.msk.bf16.vlgmr.msra.gmra.mrb[0].mxu1 %vm435_vm1, %v1613_v34 }
  0x2c   : > { %614 = vmatpush1.bf16.msra.mxu0 %v1360_v35  ;;  %1268 = vmatpush1.bf16.msra.mxu1 %v1360_v35 }
  0x2d   : > { %615 = vmatprep.subr.bf16.mxu0 %v1365_v36  ;;  %1262 = vmatprep.subr.bf16.mxu1 %v1365_v36 }
  0x2e   : > { %509 = vmatprep.mubr.bf16.mxu0 %v1447_v2  ;;  %582 = vmatprep.mubr.bf16.mxu1 %v1447_v2 }
  0x30   : > { %616 = vmatpush1.bf16.msra.mxu0 %v1363_v37  ;;  %1269 = vmatpush1.bf16.msra.mxu1 %v1363_v37 }
  0x31   : > { %617 = vmatprep.subr.bf16.mxu0 %v1369_v38  ;;  %1263 = vmatprep.subr.bf16.mxu1 %v1369_v38 }
  0x33   : > { %1194 = vmatmul.mubr.msk.bf16.gmra.mrb[4].mxu0 %vm435_vm1, %v1366_v39  ;;  %1199 = vmatmul.mubr.msk.bf16.gmra.mrb[4].mxu1 %vm435_vm1, %v1366_v39 }
  0x34   : > { %618 = vmatpush1.bf16.msra.mxu0 %v1367_v40  ;;  %1270 = vmatpush1.bf16.msra.mxu1 %v1367_v40 }
  0x35   : > { %619 = vmatprep.subr.bf16.mxu0 %v1372_v41  ;;  %1264 = vmatprep.subr.bf16.mxu1 %v1372_v41 }
  0x36   : > { %519 = vmatprep.mubr.bf16.mxu0 %v1447_v2  ;;  %592 = vmatprep.mubr.bf16.mxu1 %v1447_v2 }
  0x38   : > { %620 = vmatpush1.bf16.msra.mxu0 %v1370_v42  ;;  %1271 = vmatpush1.bf16.msra.mxu1 %v1370_v42 }
  0x39   : > { %621 = vmatprep.subr.bf16.mxu0 %v1376_v43  ;;  %1265 = vmatprep.subr.bf16.mxu1 %v1376_v43 }
  0x3b   : > { %1195 = vmatmul.mubr.msk.bf16.gmra.mrb[8].mxu0 %vm435_vm1, %v1373_v44  ;;  %1200 = vmatmul.mubr.msk.bf16.gmra.mrb[8].mxu1 %vm435_vm1, %v1373_v44 }
  0x3c   : > { %622 = vmatpush1.bf16.msra.mxu0 %v1374_v45  ;;  %1272 = vmatpush1.bf16.msra.mxu1 %v1374_v45 }
  0x3d   : > { %529 = vmatprep.mubr.bf16.mxu0 %v1447_v2  ;;  %602 = vmatprep.mubr.bf16.mxu1 %v1447_v2 }
  0x3e   : > { %623 = vmatprep.subr.bf16.mxu0 %v1379_v46  ;;  %1266 = vmatprep.subr.bf16.mxu1 %v1379_v46 }
  0x40   : > { %624 = vmatpush1.bf16.msra.mxu0 %v1377_v48  ;;  %1273 = vmatpush1.bf16.msra.mxu1 %v1377_v48 }
  0x41   : > { %1202 = vmatprep.subr.msk.bf16.mxu0 %vm448_vm0, %v1191_v49  ;;  %1267 = vmatprep.subr.msk.bf16.mxu1 %vm448_vm0, %v1191_v49 }
  0x43   : > { %1196 = vmatmul.mubr.msk.bf16.gmra.mrb[12].mxu0 %vm435_vm1, %v1380_v51  ;;  %1201 = vmatmul.mubr.msk.bf16.gmra.mrb[12].mxu1 %vm435_vm1, %v1380_v51 }
  0x44   : > { %626 = vmatpush1.bf16.msra.mxu0 %v462_v52  ;;  %1274 = vmatpush1.bf16.msra.mxu1 %v462_v52 }
  0x45   : > { %645 = vmatprep.mubr.bf16.mxu0 %v1447_v2  ;;  %665 = vmatprep.mubr.bf16.mxu1 %v1447_v2 }
  0x4b   : > { %1203 = vmatmul.mubr.msk.bf16.vlgmr.msra.gmra.mrb[16].mxu0 %vm435_vm1, %v1613_v34  ;;  %1205 = vmatmul.mubr.msk.bf16.vlgmr.msra.gmra.mrb[16].mxu1 %vm435_vm1, %v1373_v44 }
  0x4c   : > { %655 = vmatprep.mubr.bf16.mxu0 %v1447_v2  ;;  %675 = vmatprep.mubr.bf16.mxu1 %v1447_v2  ;;  %v1714_v2 = vrot.slane %v1696_v60, %v698_v56 }
  0x53   : > { %1204 = vmatmul.mubr.msk.bf16.gmra.mrb[20].mxu0 %vm435_vm1, %v1366_v39  ;;  %1206 = vmatmul.mubr.msk.bf16.gmra.mrb[20].mxu1 %vm435_vm1, %v1380_v51 }
  0xfe   : > { %v501_v3 = vpop.f32.mrb[0].mxu0  ;;  %v574_v4 = vpop.f32.mrb[0].mxu1 }
  0xff   : > { %v718_v7 = vmul.f32 %v1699_v61, %v501_v3  ;;  %v720_v8 = vmul.f32 %v1702_v62, %v574_v4  ;;  %v503_v9 = vpop.f32.mrb[1].mxu0  ;;  %v576_v10 = vpop.f32.mrb[1].mxu1 }
 0x100   : > { %v719_v11 = vmul.f32 %v1705_v63, %v503_v9  ;;  %v721_v12 = vmul.f32 %v1708_v0, %v576_v10  ;;  %v505_v13 = vpop.f32.mrb[2].mxu0  ;;  %v578_v14 = vpop.f32.mrb[2].mxu1 }
 0x101   : > { %v799_v15 = vadd.f32 %v1711_v1, %v718_v7  ;;  %v801_v16 = vadd.f32 %v1714_v2, %v720_v8  ;;  %v724_v17 = vmul.f32 %v1699_v61, %v505_v13  ;;  %v726_v18 = vmul.f32 %v1702_v62, %v578_v14  ;;  %v507_v19 = vpop.f32.mrb[3].mxu0  ;;  %v580_v20 = vpop.f32.mrb[3].mxu1 }
 0x102   : > { %v800_v21 = vadd.f32 %v1718_v5, %v719_v11  ;;  %v802_v22 = vadd.f32 %v1721_v6, %v721_v12  ;;  %v725_v23 = vmul.f32 %v1705_v63, %v507_v19  ;;  %v727_v24 = vmul.f32 %v1708_v0, %v580_v20 }
 0x103   : > { %v847_v25 = vmax.f32 %v799_v15, 0.0  ;;  %v849_v26 = vmax.f32 %v801_v16, 0.0  ;;  %v805_v27 = vadd.f32 %v1711_v1, %v724_v17  ;;  %v807_v28 = vadd.f32 %v1714_v2, %v726_v18 }
 0x104   : > { %v848_v29 = vmax.f32 %v800_v21, 0.0  ;;  %v850_v30 = vmax.f32 %v802_v22, 0.0  ;;  %v806_v31 = vadd.f32 %v1718_v5, %v725_v23  ;;  %v808_v32 = vadd.f32 %v1721_v6, %v727_v24 }
 0x105   : > { %v853_v33 = vmax.f32 %v805_v27, 0.0  ;;  %v855_v34 = vmax.f32 %v807_v28, 0.0  ;;  %v706_v28 = vsub.s32 4, %v1682_v54 }
 0x106   : > { %v1237_v35 = vpack.c.bf16 %v848_v29, %v847_v25  ;;  %v1238_v36 = vpack.c.bf16 %v850_v30, %v849_v26  ;;  %v854_v37 = vmax.f32 %v806_v31, 0.0  ;;  %v856_v38 = vmax.f32 %v808_v32, 0.0  ;;  %v511_v39 = vpop.f32.mrb[4].mxu0  ;;  %v584_v40 = vpop.f32.mrb[4].mxu1 }
 0x107   : > { %v730_v41 = vmul.f32 %v1699_v61, %v511_v39  ;;  %v732_v42 = vmul.f32 %v1702_v62, %v584_v40  ;;  %v513_v43 = vpop.f32.mrb[5].mxu0  ;;  %v586_v44 = vpop.f32.mrb[5].mxu1  ;;  %v710_v29 = vsub.s32 5, %v1682_v54 }
 0x108   : > { %1039 = vst [vmem:[%s1743_s25] sm:$0xff] %v1237_v35  ;;  %1040 = vst [vmem:[%s1743_s25 + $0x8] sm:$0xff] %v1238_v36  ;;  %v1240_v45 = vpack.c.bf16 %v854_v37, %v853_v33  ;;  %v1241_v46 = vpack.c.bf16 %v856_v38, %v855_v34  ;;  %v731_v47 = vmul.f32 %v1705_v63, %v513_v43  ;;  %v515_v49 = vpop.f32.mrb[6].mxu0  ;;  %v588_v50 = vpop.f32.mrb[6].mxu1 }
 0x109   : > { %v733_v48 = vmul.f32 %v1708_v0, %v586_v44  ;;  %v811_v51 = vadd.f32 %v1711_v1, %v730_v41  ;;  %v813_v52 = vadd.f32 %v1714_v2, %v732_v42  ;;  %v736_v53 = vmul.f32 %v1699_v61, %v515_v49  ;;  %v517_v56 = vpop.f32.mrb[7].mxu0  ;;  %v590_v58 = vpop.f32.mrb[7].mxu1 }
 0x10a   : > { %v738_v55 = vmul.f32 %v1702_v62, %v588_v50  ;;  %1042 = vst [vmem:[%s1743_s25 + $0x18] sm:$0xff] %v1240_v45  ;;  %1043 = vst [vmem:[%s1743_s25 + $0x20] sm:$0xff] %v1241_v46  ;;  %v812_v59 = vadd.f32 %v1718_v5, %v731_v47  ;;  %v737_v4 = vmul.f32 %v1705_v63, %v517_v56 }
 0x10b   : > { %v814_v3 = vadd.f32 %v1721_v6, %v733_v48  ;;  %v739_v7 = vmul.f32 %v1708_v0, %v590_v58  ;;  %v859_v8 = vmax.f32 %v811_v51, 0.0  ;;  %v861_v9 = vmax.f32 %v813_v52, 0.0 }
 0x10c   : > { %v817_v10 = vadd.f32 %v1711_v1, %v736_v53  ;;  %v819_v11 = vadd.f32 %v1714_v2, %v738_v55  ;;  %v860_v12 = vmax.f32 %v812_v59, 0.0  ;;  %v818_v14 = vadd.f32 %v1718_v5, %v737_v4 }
 0x10d   : > { %v862_v13 = vmax.f32 %v814_v3, 0.0  ;;  %v820_v15 = vadd.f32 %v1721_v6, %v739_v7 }
 0x10e   : > { %v865_v16 = vmax.f32 %v817_v10, 0.0  ;;  %v867_v17 = vmax.f32 %v819_v11, 0.0  ;;  %v1243_v18 = vpack.c.bf16 %v860_v12, %v859_v8  ;;  %v866_v20 = vmax.f32 %v818_v14, 0.0  ;;  %v521_v22 = vpop.f32.mrb[8].mxu0  ;;  %v594_v23 = vpop.f32.mrb[8].mxu1 }
 0x10f   : > { %v1244_v19 = vpack.c.bf16 %v862_v13, %v861_v9  ;;  %v868_v21 = vmax.f32 %v820_v15, 0.0  ;;  %v742_v24 = vmul.f32 %v1699_v61, %v521_v22  ;;  %v744_v25 = vmul.f32 %v1702_v62, %v594_v23  ;;  %v523_v26 = vpop.f32.mrb[9].mxu0  ;;  %v596_v27 = vpop.f32.mrb[9].mxu1 }
 0x110   : > { %1045 = vst [vmem:[%s1743_s25 + $0x30] sm:$0xff] %v1243_v18  ;;  %v1246_v30 = vpack.c.bf16 %v866_v20, %v865_v16  ;;  %v743_v32 = vmul.f32 %v1705_v63, %v523_v26  ;;  %v745_v33 = vmul.f32 %v1708_v0, %v596_v27  ;;  %v525_v34 = vpop.f32.mrb[10].mxu0  ;;  %v598_v35 = vpop.f32.mrb[10].mxu1  ;;  %v1790_v13 = vrot.slane %v1689_v57, %v706_v28 }
 0x111   : > { %1046 = vst [vmem:[%s1743_s25 + $0x38] sm:$0xff] %v1244_v19  ;;  %v1247_v31 = vpack.c.bf16 %v868_v21, %v867_v17  ;;  %v823_v36 = vadd.f32 %v1711_v1, %v742_v24  ;;  %v825_v37 = vadd.f32 %v1714_v2, %v744_v25  ;;  %v748_v38 = vmul.f32 %v1699_v61, %v525_v34  ;;  %v527_v40 = vpop.f32.mrb[11].mxu0  ;;  %v600_v41 = vpop.f32.mrb[11].mxu1 }
 0x112   : > { %v750_v39 = vmul.f32 %v1702_v62, %v598_v35  ;;  %1048 = vst [vmem:[%s1743_s25 + $0x48] sm:$0xff] %v1246_v30  ;;  %v824_v42 = vadd.f32 %v1718_v5, %v743_v32  ;;  %v826_v43 = vadd.f32 %v1721_v6, %v745_v33  ;;  %v749_v44 = vmul.f32 %v1705_v63, %v527_v40 }
 0x113   : > { %1049 = vst [vmem:[%s1743_s25 + $0x50] sm:$0xff] %v1247_v31  ;;  %v751_v45 = vmul.f32 %v1708_v0, %v600_v41  ;;  %v871_v46 = vmax.f32 %v823_v36, 0.0  ;;  %v873_v47 = vmax.f32 %v825_v37, 0.0  ;;  %v829_v48 = vadd.f32 %v1711_v1, %v748_v38 }
 0x114   : > { %v831_v49 = vadd.f32 %v1714_v2, %v750_v39  ;;  %v872_v50 = vmax.f32 %v824_v42, 0.0  ;;  %v874_v51 = vmax.f32 %v826_v43, 0.0  ;;  %v830_v52 = vadd.f32 %v1718_v5, %v749_v44 }
 0x115   : > { %v832_v53 = vadd.f32 %v1721_v6, %v751_v45  ;;  %v877_v55 = vmax.f32 %v829_v48, 0.0  ;;  %v1795_v14 = vrot.slane %v1689_v57, %v710_v29 }
 0x116   : > { %v879_v56 = vmax.f32 %v831_v49, 0.0  ;;  %v1249_v58 = vpack.c.bf16 %v872_v50, %v871_v46  ;;  %v1250_v59 = vpack.c.bf16 %v874_v51, %v873_v47  ;;  %v878_v3 = vmax.f32 %v830_v52, 0.0  ;;  %v531_v7 = vpop.f32.mrb[12].mxu0  ;;  %v604_v8 = vpop.f32.mrb[12].mxu1 }
 0x117   : > { %v880_v4 = vmax.f32 %v832_v53, 0.0  ;;  %v754_v9 = vmul.f32 %v1699_v61, %v531_v7  ;;  %v756_v10 = vmul.f32 %v1702_v62, %v604_v8  ;;  %v533_v11 = vpop.f32.mrb[13].mxu0  ;;  %v606_v12 = vpop.f32.mrb[13].mxu1 }
 0x118   : > { %1051 = vst [vmem:[%s1743_s25 + $0x60] sm:$0xff] %v1249_v58  ;;  %1052 = vst [vmem:[%s1743_s25 + $0x68] sm:$0xff] %v1250_v59  ;;  %v1252_v15 = vpack.c.bf16 %v878_v3, %v877_v55  ;;  %v755_v17 = vmul.f32 %v1705_v63, %v533_v11  ;;  %v757_v18 = vmul.f32 %v1708_v0, %v606_v12  ;;  %v535_v19 = vpop.f32.mrb[14].mxu0  ;;  %v608_v20 = vpop.f32.mrb[14].mxu1 }
 0x119   : > { %v1253_v16 = vpack.c.bf16 %v880_v4, %v879_v56  ;;  %v835_v21 = vadd.f32 %v1711_v1, %v754_v9  ;;  %v837_v22 = vadd.f32 %v1714_v2, %v756_v10  ;;  %v760_v23 = vmul.f32 %v1699_v61, %v535_v19  ;;  %v537_v24 = vpop.f32.mrb[15].mxu0  ;;  %v610_v25 = vpop.f32.mrb[15].mxu1 }
 0x11a   : > { %v762_v57 = vmul.f32 %v1702_v62, %v608_v20  ;;  %1054 = vst [vmem:[%s1743_s25 + $0x78] sm:$0xff] %v1252_v15  ;;  %v836_v26 = vadd.f32 %v1718_v5, %v755_v17  ;;  %v838_v27 = vadd.f32 %v1721_v6, %v757_v18  ;;  %v761_v30 = vmul.f32 %v1705_v63, %v537_v24 }
 0x11b   : > { %1055 = vst [vmem:[%s1743_s25 + $0x80] sm:$0xff] %v1253_v16  ;;  %v763_v31 = vmul.f32 %v1708_v0, %v610_v25  ;;  %v883_v32 = vmax.f32 %v835_v21, 0.0  ;;  %v885_v33 = vmax.f32 %v837_v22, 0.0  ;;  %v841_v34 = vadd.f32 %v1711_v1, %v760_v23 }
 0x11c   : > { %v843_v61 = vadd.f32 %v1714_v2, %v762_v57  ;;  %v884_v35 = vmax.f32 %v836_v26, 0.0  ;;  %v886_v62 = vmax.f32 %v838_v27, 0.0  ;;  %v842_v36 = vadd.f32 %v1718_v5, %v761_v30 }
 0x11d   : > { %v844_v37 = vadd.f32 %v1721_v6, %v763_v31  ;;  %v889_v38 = vmax.f32 %v841_v34, 0.0  ;;  %v1818_v63 = vrot.slane %v1696_v60, %v706_v28  ;;  %v1823_v0 = vrot.slane %v1696_v60, %v710_v29 }
 0x11e   : > { %v891_v39 = vmax.f32 %v843_v61, 0.0  ;;  %v1255_v1 = vpack.c.bf16 %v884_v35, %v883_v32  ;;  %v1256_v2 = vpack.c.bf16 %v886_v62, %v885_v33  ;;  %v890_v40 = vmax.f32 %v842_v36, 0.0  ;;  %v647_v41 = vpop.f32.mrb[16].mxu0  ;;  %v667_v42 = vpop.f32.mrb[16].mxu1 }
 0x11f   : > { %v892_v5 = vmax.f32 %v844_v37, 0.0  ;;  %v722_v6 = vmul.f32 %v1790_v13, %v647_v41  ;;  %v746_v43 = vmul.f32 %v1790_v13, %v667_v42  ;;  %v649_v44 = vpop.f32.mrb[17].mxu0  ;;  %v669_v45 = vpop.f32.mrb[17].mxu1 }
 0x120   : > { %1057 = vst [vmem:[%s1743_s25 + $0x90] sm:$0xff] %v1255_v1  ;;  %1058 = vst [vmem:[%s1743_s25 + $0x98] sm:$0xff] %v1256_v2  ;;  %v1258_v54 = vpack.c.bf16 %v890_v40, %v889_v38  ;;  %v723_v60 = vmul.f32 %v1795_v14, %v649_v44  ;;  %v747_v29 = vmul.f32 %v1795_v14, %v669_v45  ;;  %v651_v46 = vpop.f32.mrb[18].mxu0  ;;  %v671_v47 = vpop.f32.mrb[18].mxu1 }
 0x121   : > { %v1259_v28 = vpack.c.bf16 %v892_v5, %v891_v39  ;;  %v803_v48 = vadd.f32 %v1818_v63, %v722_v6  ;;  %v827_v49 = vadd.f32 %v1818_v63, %v746_v43  ;;  %v728_v50 = vmul.f32 %v1790_v13, %v651_v46  ;;  %v653_v52 = vpop.f32.mrb[19].mxu0  ;;  %v673_v53 = vpop.f32.mrb[19].mxu1 }
 0x122   : > { %v752_v51 = vmul.f32 %v1790_v13, %v671_v47  ;;  %1060 = vst [vmem:[%s1743_s25 + $0xa8] sm:$0xff] %v1258_v54  ;;  %v804_v55 = vadd.f32 %v1823_v0, %v723_v60  ;;  %v828_v56 = vadd.f32 %v1823_v0, %v747_v29  ;;  %v729_v58 = vmul.f32 %v1795_v14, %v653_v52 }
 0x123   : > { %1061 = vst [vmem:[%s1743_s25 + $0xb0] sm:$0xff] %v1259_v28  ;;  %v753_v59 = vmul.f32 %v1795_v14, %v673_v53  ;;  %v851_v3 = vmax.f32 %v803_v48, 0.0  ;;  %v875_v4 = vmax.f32 %v827_v49, 0.0  ;;  %v809_v7 = vadd.f32 %v1818_v63, %v728_v50 }
 0x124   : > { %v833_v8 = vadd.f32 %v1818_v63, %v752_v51  ;;  %v852_v9 = vmax.f32 %v804_v55, 0.0  ;;  %v876_v10 = vmax.f32 %v828_v56, 0.0  ;;  %v810_v11 = vadd.f32 %v1823_v0, %v729_v58 }
 0x125   : > { %v834_v12 = vadd.f32 %v1823_v0, %v753_v59  ;;  %v857_v15 = vmax.f32 %v809_v7, 0.0 }
 0x126   : > { %v881_v16 = vmax.f32 %v833_v8, 0.0  ;;  %v1239_v17 = vpack.c.bf16 %v852_v9, %v851_v3  ;;  %v1251_v18 = vpack.c.bf16 %v876_v10, %v875_v4  ;;  %v858_v19 = vmax.f32 %v810_v11, 0.0  ;;  %v657_v21 = vpop.f32.mrb[20].mxu0  ;;  %v677_v22 = vpop.f32.mrb[20].mxu1 }
 0x127   : > { %v882_v20 = vmax.f32 %v834_v12, 0.0  ;;  %v734_v23 = vmul.f32 %v1790_v13, %v657_v21  ;;  %v758_v57 = vmul.f32 %v1790_v13, %v677_v22  ;;  %v659_v24 = vpop.f32.mrb[21].mxu0  ;;  %v679_v25 = vpop.f32.mrb[21].mxu1 }
 0x128   : > { %1041 = vst [vmem:[%s1743_s25 + $0x10] sm:$0xff] %v1239_v17  ;;  %1053 = vst [vmem:[%s1743_s25 + $0x70] sm:$0xff] %v1251_v18  ;;  %v1242_v26 = vpack.c.bf16 %v858_v19, %v857_v15  ;;  %v735_v30 = vmul.f32 %v1795_v14, %v659_v24  ;;  %v759_v31 = vmul.f32 %v1795_v14, %v679_v25  ;;  %v661_v32 = vpop.f32.mrb[22].mxu0  ;;  %v681_v33 = vpop.f32.mrb[22].mxu1 }
 0x129   : > { %v1254_v27 = vpack.c.bf16 %v882_v20, %v881_v16  ;;  %v815_v34 = vadd.f32 %v1818_v63, %v734_v23  ;;  %v839_v61 = vadd.f32 %v1818_v63, %v758_v57  ;;  %v740_v35 = vmul.f32 %v1790_v13, %v661_v32  ;;  %v663_v36 = vpop.f32.mrb[23].mxu0  ;;  %v683_v37 = vpop.f32.mrb[23].mxu1 }
 0x12a   : > { %v764_v62 = vmul.f32 %v1790_v13, %v681_v33  ;;  %1044 = vst [vmem:[%s1743_s25 + $0x28] sm:$0xff] %v1242_v26  ;;  %v816_v38 = vadd.f32 %v1823_v0, %v735_v30  ;;  %v840_v39 = vadd.f32 %v1823_v0, %v759_v31  ;;  %v741_v1 = vmul.f32 %v1795_v14, %v663_v36 }
 0x12b   : > { %1056 = vst [vmem:[%s1743_s25 + $0x88] sm:$0xff] %v1254_v27  ;;  %v765_v2 = vmul.f32 %v1795_v14, %v683_v37  ;;  %v863_v40 = vmax.f32 %v815_v34, 0.0  ;;  %v887_v5 = vmax.f32 %v839_v61, 0.0  ;;  %v821_v41 = vadd.f32 %v1818_v63, %v740_v35 }
 0x12c   : > { %v845_v13 = vadd.f32 %v1818_v63, %v764_v62  ;;  %v864_v42 = vmax.f32 %v816_v38, 0.0  ;;  %v888_v6 = vmax.f32 %v840_v39, 0.0  ;;  %v822_v43 = vadd.f32 %v1823_v0, %v741_v1 }
 0x12d   : > { %v846_v44 = vadd.f32 %v1823_v0, %v765_v2  ;;  %v869_v14 = vmax.f32 %v821_v41, 0.0 }
 0x12e   : > { %v893_v45 = vmax.f32 %v845_v13, 0.0  ;;  %v1245_v54 = vpack.c.bf16 %v864_v42, %v863_v40  ;;  %v1257_v28 = vpack.c.bf16 %v888_v6, %v887_v5  ;;  %v870_v60 = vmax.f32 %v822_v43, 0.0 }
 0x12f   : > { %v894_v29 = vmax.f32 %v846_v44, 0.0 }
 0x130   : > { %1047 = vst [vmem:[%s1743_s25 + $0x40] sm:$0xff] %v1245_v54  ;;  %1059 = vst [vmem:[%s1743_s25 + $0xa0] sm:$0xff] %v1257_v28  ;;  %v1248_v63 = vpack.c.bf16 %v870_v60, %v869_v14 }
 0x131   : > { %v1260_v0 = vpack.c.bf16 %v894_v29, %v893_v45 }
 0x132   : > { %1050 = vst [vmem:[%s1743_s25 + $0x58] sm:$0xff] %v1248_v63 }
 0x133   : > { %1062 = vst [vmem:[%s1743_s25 + $0xb8] sm:$0xff] %v1260_v0 }
 0x134   : > { %1396 = shalt.err (!%p1393_p3)
}
 0x135   : > { %s1397_s9 = scalar_lea.hbm %s1870_s16, 3072  ;;  %s1401_s11 = scalar_lea.hbm %s1924_s3, 24576 }
 0x136   : > { %p1398_p4 = scmp.ne.s32.totalorder %s1870_s16, %s1397_s9  ;;  %p1402_p9 = scmp.lt.u32.totalorder %s1870_s16, %s1924_s3 }
 0x137   : > { %p1403_p10 = scmp.lt.u32.totalorder %s1401_s11, %s1397_s9  ;;  %p1405_p12 = scmp.lt.u32.totalorder %s1397_s9, %s1870_s16 }
 0x138   : > { %p1399_p7 = pnand %p1398_p4, %p1509_p5 }
 0x139   : > { %p1404_p11 = por %p1403_p10, %p1402_p9 }
 0x13a   : > { %p1400_p8 = pneg %p1399_p7 }
 0x13b   : > { %p1406_p13 = por %p1405_p12, %p1404_p11 }
 0x13d   : > { %p1407_p0 = pnand %p1406_p13, %p1400_p8 }
 0x13f   : > { %1410 = shalt.err (!%p1407_p0)
}
 0x140   : > { %s1449_s20 = smov 384   ;;  %s1450_s24 = smov 24  }
 0x141   : > { %1277 = dma.vmem_to_hbm [thread:$0]  (%p1509_p5), %s1872_s27, 3072, %s1870_s16, %s1880_s4, %s1449_s20, %s1449_s20, %s1450_s24  }
 0x142 PF: > { %p1283_p1 = scmp.ge.s32.totalorder %s1445_s15, 2  ;;  %s1093_s25 = sand.u32 1, %s1433_s12  }
 0x143   : > { %s1094_s26 = scalar_lea.sflag [#allocation3], %s1093_s25 }
 0x144   : > { %p1280_p2 = pnand %p1283_p1, %p1513_p6 }
 0x146   : > { %1428 = dma.done.wait (!%p1280_p2), %s1094_s26, 3072  }
 0x147   : > { %1430 = vsyncadd (!%p1280_p2), %s1094_s26, 4294964224  ;;  %p13_p3 = scmp.ge.s32.totalorder %s1496_s18, 10   ;;  %s1927_s12 = smov %s1437_s13 }
 0x148   : > { %s1928_s13 = smov %s1441_s14  ;;  %s1929_s14 = smov %s1507_s21 }
 0x149   : > { %s1930_s15 = smov %s1496_s18  ;;  %15 = sbr.rel (!%p13_p3) target bundleno = 3 (0x3), region = 68 }
 0x150   :  { %1099 = vsyncpa [#allocation3], 1 }
 0x151   :  { %1101 = vsyncpa [#allocation3 + $0x1], 1 }

</bundles_post_ra>
